<compile_context>
chip_gen: v6e
topology: v6e:2x2x1
jax: 0.10.0
libtpu: 0.0.40
codegen_flags: <defaults>
</compile_context>

<pallas_src>
import functools

import jax
import jax.numpy as jnp
from jax import lax
from jax.experimental import pallas as pl
from jax.experimental.pallas import tpu as pltpu

EPS = 1e-5


# ------------------------------ Pallas kernels ------------------------------

def _down_conv_kernel(x_ref, w_ref, bias_ref, o_ref):
    """2x2x2 / stride-2 conv as one matmul over a space-to-depth depth tile.

    x_ref: (1, td, Ho, Wo, 8*Cin)   w_ref: (8*Cin, Cout)  [BN scale pre-folded]
    bias_ref: (1, Cout)             o_ref: (1, td, Ho, Wo, Cout)
    """
    _, td, Ho, Wo, K = x_ref.shape
    Cout = w_ref.shape[-1]
    rows = td * Ho * Wo
    y = jnp.dot(x_ref[...].reshape(rows, K), w_ref[...],
                preferred_element_type=jnp.float32)
    y = jnp.maximum(y + bias_ref[...], 0.0)           # folded BN bias + ReLU
    o_ref[...] = y.reshape(1, td, Ho, Wo, Cout).astype(o_ref.dtype)


def _conv3_kernel(xc_ref, xt_ref, xb_ref, w_ref, bias_ref, *rest,
                  relu, add_res):
    """3x3x3 conv (pad=1, stride=1) on a depth tile + folded BN (+res) (+ReLU).

    xc_ref: (1, td, H, W, C)      center depth rows of the tile
    xt_ref / xb_ref: (1, 1, H, W, C)  depth halo rows (clamped index maps;
                                       zero-masked at the volume boundary)
    w_ref:  (27*C, Cout)          im2col weights, BN scale pre-folded
    bias_ref: (1, Cout)           [res_ref: (1, td, H, W, Cout)]
    o_ref:  (1, td, H, W, Cout)
    scratch: xbuf (td+2, H+2, W+2, C), xcol (td*H*W, 27*C)
    """
    if add_res:
        res_ref, o_ref, xbuf, xcol = rest
    else:
        o_ref, xbuf, xcol = rest

    d = pl.program_id(1)
    nd = pl.num_programs(1)
    _, td, H, W, C = xc_ref.shape
    Cout = w_ref.shape[-1]
    rows = td * H * W
    dt = xc_ref.dtype

    # -- assemble the zero-padded (td+2, H+2, W+2, C) activation tile --------
    # H/W zero shell (rewritten every step: scratch persists across grid steps
    # and the grid may be sharded across TensorCores).
    xbuf[:, 0:1, :, :] = jnp.zeros((td + 2, 1, W + 2, C), dt)
    xbuf[:, H + 1:H + 2, :, :] = jnp.zeros((td + 2, 1, W + 2, C), dt)
    xbuf[:, 1:H + 1, 0:1, :] = jnp.zeros((td + 2, H, 1, C), dt)
    xbuf[:, 1:H + 1, W + 1:W + 2, :] = jnp.zeros((td + 2, H, 1, C), dt)

    # center depth rows of this tile
    xbuf[1:1 + td, 1:H + 1, 1:W + 1, :] = xc_ref[0]

    # depth halo rows (zero at the volume boundary)
    @pl.when(d > 0)
    def _():
        xbuf[0:1, 1:H + 1, 1:W + 1, :] = xt_ref[0]

    @pl.when(d == 0)
    def _():
        xbuf[0:1, 1:H + 1, 1:W + 1, :] = jnp.zeros((1, H, W, C), dt)

    @pl.when(d < nd - 1)
    def _():
        xbuf[1 + td:2 + td, 1:H + 1, 1:W + 1, :] = xb_ref[0]

    @pl.when(d == nd - 1)
    def _():
        xbuf[1 + td:2 + td, 1:H + 1, 1:W + 1, :] = jnp.zeros((1, H, W, C), dt)

    # -- im2col once into VMEM scratch, then one deep-K contraction ----------
    for kd in range(3):
        for kh in range(3):
            for kw in range(3):
                tap = (kd * 3 + kh) * 3 + kw
                xs = xbuf[kd:kd + td, kh:kh + H, kw:kw + W, :]
                xcol[:, tap * C:(tap + 1) * C] = xs.reshape(rows, C)

    y = jnp.dot(xcol[...], w_ref[...], preferred_element_type=jnp.float32)
    y = y + bias_ref[...]                              # folded BN bias
    if add_res:
        y = y + res_ref[...].reshape(rows, Cout)       # fused residual add
    if relu:
        y = jnp.maximum(y, 0.0)
    o_ref[...] = y.reshape(1, td, H, W, Cout).astype(o_ref.dtype)


# ------------------------------ tiling helpers ------------------------------

def _choose_d_tile(n_batch, depth, bytes_per_row, budget_bytes=4 << 20,
                   min_steps=8):
    """Largest depth tile fitting the per-step budget, then shrunk until the
    grid has enough steps to pipeline DMAs / feed both v7x TensorCores."""
    divisors = [t for t in range(1, depth + 1) if depth % t == 0]
    fitting = [t for t in divisors if t * bytes_per_row <= budget_bytes]
    td = max(fitting) if fitting else 1
    while td > 1 and n_batch * (depth // td) < min_steps:
        td = max(t for t in divisors if t < td)
    return td


def _vmem_limit(est_bytes):
    # leave headroom under v7x's 64 MiB physical VMEM
    return int(min(48 << 20, max(16 << 20, 2 * est_bytes)))


# ------------------------------ Pallas wrappers ------------------------------

def down_conv_bn_relu(x_s2d, w_mat, bias, d_tile=None):
    """x_s2d: (N, Do, Ho, Wo, 8*Cin); w_mat: (8*Cin, Cout), BN scale folded."""
    N, Do, Ho, Wo, K = x_s2d.shape
    Cout = w_mat.shape[-1]
    itemsize = x_s2d.dtype.itemsize
    td = d_tile or _choose_d_tile(
        N, Do, bytes_per_row=itemsize * Ho * Wo * (K + Cout) * 3)
    nd = Do // td
    est = itemsize * (2 * td * Ho * Wo * (K + Cout) + K * Cout + Cout)

    return pl.pallas_call(
        _down_conv_kernel,
        out_shape=jax.ShapeDtypeStruct((N, Do, Ho, Wo, Cout), x_s2d.dtype),
        grid_spec=pltpu.PrefetchScalarGridSpec(
            num_scalar_prefetch=0,
            grid=(N, nd),
            in_specs=[
                pl.BlockSpec((1, td, Ho, Wo, K), lambda n, d: (n, d, 0, 0, 0)),
                pl.BlockSpec((K, Cout), lambda n, d: (0, 0)),
                pl.BlockSpec((1, Cout), lambda n, d: (0, 0)),
            ],
            out_specs=pl.BlockSpec((1, td, Ho, Wo, Cout),
                                   lambda n, d: (n, d, 0, 0, 0)),
        ),
        compiler_params=pltpu.CompilerParams(
            dimension_semantics=("parallel", "parallel"),
            vmem_limit_bytes=_vmem_limit(est)),
    )(x_s2d, w_mat, bias)


def conv3_bn(x, w2, bias, residual=None, relu=True, d_tile=None):
    """x: (N, D, H, W, C); w2: (27*C, Cout) im2col weights, BN scale folded."""
    N, D, H, W, C = x.shape
    Cout = w2.shape[-1]
    add_res = residual is not None
    itemsize = x.dtype.itemsize

    td = d_tile or _choose_d_tile(
        N, D, bytes_per_row=itemsize * H * W * C * 35)
    nd = D // td
    rows = td * H * W

    est = itemsize * (
        2 * (td * H * W * C + 2 * H * W * C)                 # activation blocks
        + 2 * rows * Cout * (2 if add_res else 1)            # out (+ residual)
        + (td + 2) * (H + 2) * (W + 2) * C                   # xbuf scratch
        + rows * 27 * C                                      # im2col scratch
        + 27 * C * Cout + Cout)

    kernel = functools.partial(_conv3_kernel, relu=relu, add_res=add_res)
    in_specs = [
        pl.BlockSpec((1, td, H, W, C), lambda n, d: (n, d, 0, 0, 0)),
        # depth halo rows: element rows d*td-1 / d*td+td, clamped in range
        # (the kernel zero-masks them at the volume boundary).
        pl.BlockSpec((1, 1, H, W, C),
                     lambda n, d: (n, jnp.maximum(d * td - 1, 0), 0, 0, 0)),
        pl.BlockSpec((1, 1, H, W, C),
                     lambda n, d: (n, jnp.minimum(d * td + td, D - 1), 0, 0, 0)),
        pl.BlockSpec((27 * C, Cout), lambda n, d: (0, 0)),
        pl.BlockSpec((1, Cout), lambda n, d: (0, 0)),
    ]
    args = [x, x, x, w2, bias]
    if add_res:
        in_specs.append(
            pl.BlockSpec((1, td, H, W, Cout), lambda n, d: (n, d, 0, 0, 0)))
        args.append(residual)

    return pl.pallas_call(
        kernel,
        out_shape=jax.ShapeDtypeStruct((N, D, H, W, Cout), x.dtype),
        grid_spec=pltpu.PrefetchScalarGridSpec(
            num_scalar_prefetch=0,
            grid=(N, nd),
            in_specs=in_specs,
            out_specs=pl.BlockSpec((1, td, H, W, Cout),
                                   lambda n, d: (n, d, 0, 0, 0)),
            scratch_shapes=[
                pltpu.VMEM((td + 2, H + 2, W + 2, C), x.dtype),
                pltpu.VMEM((rows, 27 * C), x.dtype),
            ],
        ),
        compiler_params=pltpu.CompilerParams(
            dimension_semantics=("parallel", "parallel"),
            vmem_limit_bytes=_vmem_limit(est)),
    )(*args)


# ------------------------------ params / forward ------------------------------

def init_params(key, in_channels, num_convs):
    C2 = in_channels * 2
    keys = iter(jax.random.split(key, 6 + 6 * num_convs))

    def nrm(shape, s=0.1):
        return s * jax.random.normal(next(keys), shape, jnp.float32)

    def bn_params():
        return dict(
            gamma=1.0 + nrm((C2,)),
            beta=nrm((C2,)),
            mean=nrm((C2,)),
            var=jax.random.uniform(next(keys), (C2,), jnp.float32, 0.5, 1.5),
        )

    params = {
        "down_w": nrm((C2, in_channels, 2, 2, 2)),   # PyTorch OIDHW layout
        "down_b": nrm((C2,)),
        "down_bn": bn_params(),
        "res": [],
    }
    for _ in range(num_convs):
        params["res"].append(dict(
            w=nrm((C2, C2, 3, 3, 3)),                # PyTorch OIDHW layout
            b=nrm((C2,)),
            bn=bn_params(),
        ))
    return params


def fold_bn(w_mat, conv_bias, bn):
    """Fold eval-mode BatchNorm into matmul weights/bias (Cout is last axis)."""
    scale = bn["gamma"] / jnp.sqrt(bn["var"] + EPS)
    w_f = w_mat * scale[None, :]
    b_f = (conv_bias - bn["mean"]) * scale + bn["beta"]
    return w_f, b_f[None, :]


def downblock_forward(x_ndhwc, params, d_tile=None):
    """DownBlock forward: (N, D, H, W, Cin) -> (N, D/2, H/2, W/2, 2*Cin)."""
    N, D, H, W, Cin = x_ndhwc.shape
    C2 = params["down_w"].shape[0]
    Do, Ho, Wo = D // 2, H // 2, W // 2

    # --- down conv (k=2, s=2): space-to-depth + fused matmul / BN / ReLU ---
    x2 = x_ndhwc.reshape(N, Do, 2, Ho, 2, Wo, 2, Cin)
    x2 = x2.transpose(0, 1, 3, 5, 2, 4, 6, 7).reshape(N, Do, Ho, Wo, 8 * Cin)
    w_mat = params["down_w"].transpose(2, 3, 4, 1, 0).reshape(8 * Cin, C2)
    w_mat, bias = fold_bn(w_mat, params["down_b"], params["down_bn"])
    y = down_conv_bn_relu(x2, w_mat, bias, d_tile=d_tile)

    # --- ResidualBlock3: num_convs x (3x3x3 conv + BN [+ ReLU]) + skip ---
    residual = y
    out = y
    nc = len(params["res"])
    for i, p in enumerate(params["res"]):
        w2 = p["w"].transpose(2, 3, 4, 1, 0).reshape(27 * C2, C2)  # (kd,kh,kw,ci) rows
        w2, b = fold_bn(w2, p["b"], p["bn"])
        last = (i == nc - 1)
        out = conv3_bn(out, w2, b,
                       residual=residual if last else None,
                       relu=True, d_tile=d_tile)
    return out


# ------------------------------ pure-JAX reference ------------------------------

def _bn_ref(x, bn):
    def b(v):
        return v[None, :, None, None, None]
    return (x - b(bn["mean"])) / jnp.sqrt(b(bn["var"]) + EPS) * b(bn["gamma"]) \
        + b(bn["beta"])


def _conv3d_ref(x, w, bias, stride, pad):
    y = lax.conv_general_dilated(
        x, w, window_strides=stride, padding=[(pad, pad)] * 3,
        dimension_numbers=("NCDHW", "OIDHW", "NCDHW"))
    return y + bias[None, :, None, None, None]


def ref_forward(x_ncdhw, params):
    y = _conv3d_ref(x_ncdhw, params["down_w"], params["down_b"], (2, 2, 2), 0)
    y = jnp.maximum(_bn_ref(y, params["down_bn"]), 0.0)
    residual = y
    out = y
    nc = len(params["res"])
    for i, p in enumerate(params["res"]):
        out = _bn_ref(_conv3d_ref(out, p["w"], p["b"], (1, 1, 1), 1), p["bn"])
        if i != nc - 1:
            out = jnp.maximum(out, 0.0)
    return jnp.maximum(out + residual, 0.0)


# ------------------------------ main ------------------------------

if __name__ == "__main__":
    in_channels, num_convs = 4, 2
    N, D, H, W = 2, 16, 16, 16     # post-downsample depth = 8 -> several tiles

    key = jax.random.PRNGKey(0)
    k_x, k_p = jax.random.split(key)
    x = jax.random.normal(k_x, (N, D, H, W, in_channels), jnp.float32)
    params = init_params(k_p, in_channels, num_convs)

    out = jax.block_until_ready(downblock_forward(x, params))
    assert out.shape == (N, D // 2, H // 2, W // 2, 2 * in_channels)

    # reference check (PyTorch semantics, NCDHW)
    x_ncdhw = jnp.transpose(x, (0, 4, 1, 2, 3))
    ref = ref_forward(x_ncdhw, params)
    ref_ndhwc = jnp.transpose(ref, (0, 2, 3, 4, 1))
    max_err = float(jnp.max(jnp.abs(out - ref_ndhwc)))
    assert max_err < 1e-3, f"mismatch vs reference: {max_err}"

    print("KERNEL_OK")
</pallas_src>

<mosaic_0001>
module attributes {stable_mosaic.version = 11 : i64} {
  func.func @_down_conv_kernel(%arg0: i32, %arg1: i32, %arg2: memref<1x2x8x8x32xf32, #tpu.memory_space<vmem>>, %arg3: memref<32x8xf32, #tpu.memory_space<vmem>>, %arg4: memref<1x8xf32, #tpu.memory_space<vmem>>, %arg5: memref<1x2x8x8x8xf32, #tpu.memory_space<vmem>>) attributes {dimension_semantics = [#tpu.dimension_semantics<parallel>, #tpu.dimension_semantics<parallel>], iteration_bounds = array<i64: 2, 4>, scalar_prefetch = 0 : i64, scratch_operands = 0 : i64, tpu.core_type = #tpu.core_type<tc>, window_params = [{transform_indices = @transform_0, window_bounds = array<i64: 1, 2, 8, 8, 32>}, {pipeline_mode = #tpu.pipeline_mode<synchronous>, transform_indices = @transform_1, window_bounds = array<i64: 32, 8>}, {pipeline_mode = #tpu.pipeline_mode<synchronous>, transform_indices = @transform_2, window_bounds = array<i64: 1, 8>}, {transform_indices = @transform_3, window_bounds = array<i64: 1, 2, 8, 8, 8>}]} {
    %c0 = arith.constant 0 : index
    %c0_0 = arith.constant 0 : index
    %c0_1 = arith.constant 0 : index
    %c0_2 = arith.constant 0 : index
    %c0_3 = arith.constant 0 : index
    %0 = vector.load %arg2[%c0, %c0_0, %c0_1, %c0_2, %c0_3] : memref<1x2x8x8x32xf32, #tpu.memory_space<vmem>>, vector<1x2x8x8x32xf32>
    %1 = vector.shape_cast %0 : vector<1x2x8x8x32xf32> to vector<128x32xf32>
    %c0_4 = arith.constant 0 : index
    %c0_5 = arith.constant 0 : index
    %2 = vector.load %arg3[%c0_4, %c0_5] : memref<32x8xf32, #tpu.memory_space<vmem>>, vector<32x8xf32>
    %cst = arith.constant dense<0.000000e+00> : vector<128x8xf32>
    %3 = tpu.matmul %1, %2, %cst {dimension_numbers = #tpu.dot_dimension_numbers<[1], [0], [0], [1], [0, 0, 1, 1], [], []>} : vector<128x32xf32>, vector<32x8xf32>, vector<128x8xf32> -> vector<128x8xf32>
    %c0_6 = arith.constant 0 : index
    %c0_7 = arith.constant 0 : index
    %4 = vector.load %arg4[%c0_6, %c0_7] : memref<1x8xf32, #tpu.memory_space<vmem>>, vector<1x8xf32>
    %5 = vector.broadcast %4 : vector<1x8xf32> to vector<128x8xf32>
    %6 = arith.addf %3, %5 : vector<128x8xf32>
    %cst_8 = arith.constant 0.000000e+00 : f32
    %7 = vector.broadcast %cst_8 : f32 to vector<128x8xf32>
    %8 = arith.maximumf %6, %7 : vector<128x8xf32>
    %9 = vector.shape_cast %8 : vector<128x8xf32> to vector<1x2x8x8x8xf32>
    %c0_9 = arith.constant 0 : index
    %c0_10 = arith.constant 0 : index
    %c0_11 = arith.constant 0 : index
    %c0_12 = arith.constant 0 : index
    %c0_13 = arith.constant 0 : index
    %10 = vector.load %arg5[%c0_9, %c0_10, %c0_11, %c0_12, %c0_13] : memref<1x2x8x8x8xf32, #tpu.memory_space<vmem>>, vector<1x2x8x8x8xf32>
    tpu.vector_store %arg5[%c0_9, %c0_10, %c0_11, %c0_12, %c0_13], %9 {strides = array<i32>} : memref<1x2x8x8x8xf32, #tpu.memory_space<vmem>>, vector<1x2x8x8x8xf32>,
    return
  }
  func.func @transform_0(%arg0: i32, %arg1: i32) -> (i32, i32, i32, i32, i32) {
    %c0_i32 = arith.constant 0 : i32
    %c0_i32_0 = arith.constant 0 : i32
    %c0_i32_1 = arith.constant 0 : i32
    %c0_i32_2 = arith.constant 0 : i32
    return %arg0, %arg1, %c0_i32, %c0_i32_0, %c0_i32_1 : i32, i32, i32, i32, i32
  }
  func.func @transform_1(%arg0: i32, %arg1: i32) -> (i32, i32) {
    %c0_i32 = arith.constant 0 : i32
    %c0_i32_0 = arith.constant 0 : i32
    %c0_i32_1 = arith.constant 0 : i32
    return %c0_i32, %c0_i32_0 : i32, i32
  }
  func.func @transform_2(%arg0: i32, %arg1: i32) -> (i32, i32) {
    %c0_i32 = arith.constant 0 : i32
    %c0_i32_0 = arith.constant 0 : i32
    %c0_i32_1 = arith.constant 0 : i32
    return %c0_i32, %c0_i32_0 : i32, i32
  }
  func.func @transform_3(%arg0: i32, %arg1: i32) -> (i32, i32, i32, i32, i32) {
    %c0_i32 = arith.constant 0 : i32
    %c0_i32_0 = arith.constant 0 : i32
    %c0_i32_1 = arith.constant 0 : i32
    %c0_i32_2 = arith.constant 0 : i32
    return %arg0, %arg1, %c0_i32, %c0_i32_0, %c0_i32_1 : i32, i32, i32, i32, i32
  }
}

</mosaic_0001>

<bundles_post_ra>
// kernel: tpu_custom_call.1
= control target key start
LH: loop header
LB: loop body
LE: loop exit
PB: predicated region body
PF: predicated region fallthrough
CT: control target
= control target key end

     0   :  { %8 = vsyncpa [#allocation3], 0  ;;  %s1175_s0 = inlined_call_operand.hbm [shape: f32[2,8,8,8,32], index: 0, kind: input, shape index: {}]   ;;  %s1176_s1 = inlined_call_operand.vmem [shape: f32[32,8], index: 1, kind: input, shape index: {}]   ;;  %s1177_s2 = inlined_call_operand.vmem [shape: f32[1,8], index: 2, kind: input, shape index: {}]   ;;  %s1178_s3 = inlined_call_operand.hbm [shape: f32[2,8,8,8,8], index: 3, kind: output, shape index: {}]  }
   0x1   :  { %10 = vsyncpa [#allocation3 + $0x1], 0 }
   0x2   :  { %11 = vsyncpa [#allocation4], 0 }
   0x3   :  { %13 = vsyncpa [#allocation4 + $0x1], 0  ;;  %s903_s12 = smov 0   ;;  %s905_s13 = smov 0  }
   0x4   :  { %s907_s14 = smov 0   ;;  %s909_s15 = smov 0  }
   0x5   :  { %s911_s16 = smov 0   ;;  %s913_s17 = smov 0  }
   0x6   :  { %s915_s18 = smov 0   ;;  %s917_s19 = smov 0  }
   0x7 LB: > { %s571_s20 = sadd.s32 4294967295, %s875_s19   ;;  %s572_s21 = sadd.s32 4294967294, %s875_s19   ;;  %s875_s19 = sphi %s917_s19, %s19_s19   ;;  %s871_s18 = sphi %s915_s18, %s1196_s18   ;;  %s867_s17 = sphi %s913_s17, %s1195_s17   ;;  %s863_s16 = sphi %s911_s16, %s1194_s16   ;;  %s859_s15 = sphi %s909_s15, %s1193_s15   ;;  %s855_s14 = sphi %s907_s14, %s1192_s14   ;;  %s851_s13 = sphi %s905_s13, %s1191_s13   ;;  %s847_s12 = sphi %s903_s12, %s1190_s12  }
   0x8   : > { %s28_s22 = sadd.s32 1, %s867_s17  ;;  %s31_s23 = sadd.s32 1, %s871_s18 }
   0x9   : > { %p29_p0 = scmp.ge.s32.totalorder %s28_s22, 4  ;;  %s40_s24 = sadd.s32 1, %s855_s14 }
   0xa   : > { %p47_p1 = scmp.ne.s32.totalorder %s855_s14, %s851_s13  ;;  %p48_p2 = scmp.eq.s32.totalorder %s875_s19, 0 }
   0xb   : > { %s1198_s22 = smov (%p29_p0, %s28_s22), 0  ;;  %s1200_s23 = smov (!%p29_p0, %s31_s23), %s871_s18 }
   0xc   : > { %1181 = sst [smem:[#allocation8_spill]] %s1198_s22  ;;  %s36_s25 = ssub.s32 %s867_s17, %s1198_s22 }
   0xd   : > { %p956_p3 = por %p48_p2, %p47_p1  ;;  %p33_p4 = scmp.ge.s32.totalorder %s1200_s23, 2 }
   0xe   : > { %p53_p5 = scmp.ne.s32.totalorder %s851_s13, %s847_s12  ;;  %p54_p6 = scmp.eq.s32.totalorder %s571_s20, 0 }
   0xf   : > { %p121_p7 = scmp.eq.s32.totalorder %s571_s20, 7  ;;  %s1202_s23 = smov (%p33_p4, %s1200_s23), 0 }
  0x10   : > { %1183 = sst [smem:[#allocation9_spill]] %s1202_s23  ;;  %p964_p8 = por %p54_p6, %p53_p5 }
  0x11   : > { %p968_p9 = por %p121_p7, %p47_p1  ;;  %s35_s29 = ssub.s32 %s871_s18, %s1202_s23 }
  0x12   : > { %p127_p10 = scmp.eq.s32.totalorder %s572_s21, 7  ;;  %s37_s30 = sor.u32 %s36_s25, %s35_s29 }
  0x13   : > { %p38_p11 = scmp.eq.s32.totalorder %s37_s30, 0  ;;  %p681_p13 = scmp.lt.s32.totalorder %s875_s19, 8 }
  0x14   : > { %p974_p12 = por %p127_p10, %p53_p5  ;;  %s153_s5 = sand.u32 1, %s855_s14  }
  0x15   : > { %s981_s6 = scalar_select %p38_p11, %s855_s14, %s40_s24  }
  0x16   : > { %s575_s7 = sshll.u32 %s153_s5, 7  ;;  %s607_s8 = sshll.u32 %s867_s17, 4 }
  0x17   : > { %s578_s9 = sshll.u32 %s871_s18, 6  ;;  %s157_s10 = scalar_lea.vmem [#allocation2], %s575_s7 }
  0x18   : > { %s167_s11 = sshll.u32 %s157_s10, 4  ;;  %s164_s20 = sadd.s32 %s607_s8, %s578_s9  ;;  %s168_s11 = int_to_ptr.vmem [resolvable:$true] %s167_s11 }
  0x19   : > { %s579_s23 = sshll.u32 %s164_s20, 7  ;;  %p987_p0 = pnand %p681_p13, %p956_p3 }
  0x1a   : > { %s166_s30 = scalar_lea.hbm %s1175_s0, %s579_s23  ;;  %s154_s24 = scalar_lea.sflag [#allocation3], %s153_s5 }
  0x1b   : > { %p753_p1 = pneg %p987_p0  ;;  %s764_s22 = scalar_lea.vmem %s168_s11, 2048 }
  0x1c   : > { %p765_p2 = scmp.ne.s32.totalorder %s168_s11, %s764_s22  ;;  %s877_s7 = smov [#allocation2]  }
  0x1d   : > { %s769_s8 = sshll.u32 %s877_s7, 4  ;;  %s770_s8 = int_to_ptr.vmem [resolvable:$false] %s769_s8 }
  0x1e   : > { %p767_p4 = pnand %p765_p2, %p753_p1  ;;  %s771_s26 = scalar_lea.vmem %s770_s8, 4096 }
  0x1f   : > { %p772_p3 = scmp.lt.s32.totalorder %s168_s11, %s770_s8  ;;  %p773_p6 = scmp.lt.s32.totalorder %s771_s26, %s764_s22 }
  0x20   : > { %p768_p5 = pneg %p767_p4 }
  0x21   : > { %p774_p7 = por %p773_p6, %p772_p3 }
  0x23   : > { %p775_p10 = pnand %p774_p7, %p768_p5 }
  0x25   : > { %778 = shalt.err (!%p775_p10)
}
  0x26   : > { %s878_s9 = smov 128   ;;  %s879_s23 = smov 8  }
  0x27   : > { %676 = dma.hbm_to_vmem [thread:$0]  (!%p987_p0), %s166_s30, 2048, %s168_s11, %s154_s24, %s878_s9, %s878_s9, %s879_s23  }
  0x28   : > { %p580_p11 = scmp.ge.s32.totalorder %s875_s19, 1  ;;  %p175_p13 = scmp.lt.s32.totalorder %s875_s19, 9 }
  0x2a   : > { %p176_p1 = pnand %p580_p11, %p175_p13 }
  0x2b   : > { %s1001_s5 = sand.u32 (!%p176_p1), 1, %s851_s13  }
  0x2c   : > { %179 = sbr.rel (%p176_p1) target bundleno = 285 (0x11d), region = 32  ;;  %s581_s22 = sshll.u32 (!%p176_p1), %s1001_s5, 7 }
  0x2d   : > { %s182_s10 = scalar_lea.sflag (!%p176_p1), [#allocation3], %s1001_s5  ;;  %s1007_s20 = scalar_lea.vmem (!%p176_p1), [#allocation2], %s581_s22 }
  0x31   : > { %838 = dma.done.wait (%p964_p8), %s182_s10, 2048  }
  0x32   : > { %840 = vsyncadd (%p964_p8), %s182_s10, 4294965248  ;;  %v229_v0 = vld [vmem:[%s1176_s1 + $0x18] sm:$0xff]  ;;  %v228_v1 = vld [vmem:[%s1176_s1 + $0x10] sm:$0xff]  ;;  %vm237_vm0 = vcmask 261120   ;;  %vm447_vm1 = vcmask 64512   ;;  %s1068_s9 = scalar_lea.vmem [#allocation5], %s581_s22 }
  0x33   : > { %629 = vmatprep.subr.mxu0 %v229_v0  ;;  %661 = vmatprep.subr.mxu1 %v229_v0  ;;  %v227_v2 = vld [vmem:[%s1176_s1 + $0x8] sm:$0xff]  ;;  %v226_v3 = vld [vmem:[%s1176_s1] sm:$0xff]  ;;  %v212_v8 = vld [vmem:[%s1007_s20 + $0x10] sm:$0xff]  ;;  %s608_s23 = sshll.u32 %s859_s15, 4  ;;  %s603_s22 = sshll.u32 %s863_s16, 6 }
  0x34   : > { %630 = vmatpush3.msra.mxu0 %v229_v0  ;;  %665 = vmatpush3.msra.mxu1 %v229_v0  ;;  %v210_v4 = vld [vmem:[%s1007_s20] sm:$0xff]  ;;  %v211_v6 = vld [vmem:[%s1007_s20 + $0x8] sm:$0xff]  ;;  %v220_v9 = vld [vmem:[%s1007_s20 + $0x50] sm:$0xff]  ;;  %s478_s10 = sadd.s32 %s608_s23, %s603_s22  ;;  %s481_s16 = sshll.u32 %s1068_s9, 4  ;;  %s1114_s16 = int_to_ptr.vmem [resolvable:$true] %s481_s16 }
  0x35   : > { %631 = vmatprep.subr.mxu0 %v228_v1  ;;  %662 = vmatprep.subr.mxu1 %v228_v1  ;;  %v218_v5 = vld [vmem:[%s1007_s20 + $0x40] sm:$0xff]  ;;  %v219_v7 = vld [vmem:[%s1007_s20 + $0x48] sm:$0xff]  ;;  %v213_v10 = vld [vmem:[%s1007_s20 + $0x18] sm:$0xff]  ;;  %s604_s15 = sshll.u32 %s478_s10, 7  ;;  %s465_s25 = scalar_lea.sflag [#allocation4], %s1001_s5 }
  0x36   : > { %632 = vmatpush3.msra.mxu0 %v228_v1  ;;  %666 = vmatpush3.msra.mxu1 %v228_v1  ;;  %v221_v11 = vld [vmem:[%s1007_s20 + $0x58] sm:$0xff]  ;;  %v214_v12 = vld [vmem:[%s1007_s20 + $0x20] sm:$0xff]  ;;  %v215_v14 = vld [vmem:[%s1007_s20 + $0x28] sm:$0xff]  ;;  %s1112_s21 = scalar_lea.hbm %s1178_s3, %s604_s15  ;;  %s779_s29 = scalar_lea.vmem %s1114_s16, 2048 }
  0x37   : > { %633 = vmatprep.subr.mxu0 %v227_v2  ;;  %663 = vmatprep.subr.mxu1 %v227_v2  ;;  %v222_v13 = vld [vmem:[%s1007_s20 + $0x60] sm:$0xff]  ;;  %v223_v15 = vld [vmem:[%s1007_s20 + $0x68] sm:$0xff]  ;;  %v216_v16 = vld [vmem:[%s1007_s20 + $0x30] sm:$0xff]  ;;  %p780_p8 = scmp.ne.s32.totalorder %s1114_s16, %s779_s29  ;;  %s880_s30 = smov [#allocation5]  }
  0x38   : > { %634 = vmatpush3.msra.mxu0 %v227_v2  ;;  %667 = vmatpush3.msra.mxu1 %v227_v2  ;;  %v224_v17 = vld [vmem:[%s1007_s20 + $0x70] sm:$0xff]  ;;  %v217_v18 = vld [vmem:[%s1007_s20 + $0x38] sm:$0xff]  ;;  %v1060_v20 = vld [vmem:[%s1177_s2] ss:$0 sm:$0xff]  ;;  %s783_s24 = sshll.u32 %s880_s30, 4  ;;  %s784_s24 = int_to_ptr.vmem [resolvable:$false] %s783_s24 }
  0x39   : > { %635 = vmatprep.subr.mxu0 %v226_v3  ;;  %664 = vmatprep.subr.mxu1 %v226_v3  ;;  %v225_v19 = vld [vmem:[%s1007_s20 + $0x78] sm:$0xff]  ;;  %p781_p0 = pnand %p780_p8, %p968_p9  ;;  %s785_s27 = scalar_lea.vmem %s784_s24, 4096 }
  0x3a   : > { %636 = vmatpush3.msra.mxu0 %v226_v3  ;;  %668 = vmatpush3.msra.mxu1 %v226_v3  ;;  %p786_p4 = scmp.lt.s32.totalorder %s1114_s16, %s784_s24  ;;  %p787_p5 = scmp.lt.s32.totalorder %s785_s27, %s779_s29 }
  0x3b   : > { %637 = vmatprep.mubr.msk.f32.mxu0 %vm237_vm0, %v210_v4  ;;  %649 = vmatprep.mubr.msk.f32.mxu1 %vm237_vm0, %v218_v5  ;;  %p782_p2 = pneg %p781_p0 }
  0x3c   : > { %638 = vmatmul.mubr.msk.f32.vlgmr.msra.gmra.mxu0 %vm237_vm0, %v211_v6  ;;  %650 = vmatmul.mubr.msk.f32.vlgmr.msra.gmra.mxu1 %vm237_vm0, %v219_v7  ;;  %p788_p3 = por %p787_p5, %p786_p4 }
  0x3d   : > { %640 = vmatprep.mubr.msk.f32.mxu0 %vm237_vm0, %v212_v8  ;;  %652 = vmatprep.mubr.msk.f32.mxu1 %vm237_vm0, %v220_v9 }
  0x3e   : > { %p789_p6 = pnand %p788_p3, %p782_p2 }
  0x40   : > { %641 = vmatmul.mubr.msk.f32.gmra.mxu0 %vm237_vm0, %v213_v10  ;;  %653 = vmatmul.mubr.msk.f32.gmra.mxu1 %vm237_vm0, %v221_v11 }
  0x41   : > { %643 = vmatprep.mubr.msk.f32.mxu0 %vm237_vm0, %v214_v12  ;;  %655 = vmatprep.mubr.msk.f32.mxu1 %vm237_vm0, %v222_v13 }
  0x44   : > { %644 = vmatmul.mubr.msk.f32.gmra.mxu0 %vm237_vm0, %v215_v14  ;;  %656 = vmatmul.mubr.msk.f32.gmra.mxu1 %vm237_vm0, %v223_v15 }
  0x45   : > { %646 = vmatprep.mubr.msk.f32.mxu0 %vm237_vm0, %v216_v16  ;;  %658 = vmatprep.mubr.msk.f32.mxu1 %vm237_vm0, %v224_v17 }
  0x48   : > { %647 = vmatmul.mubr.msk.f32.gmra.mxu0 %vm237_vm0, %v217_v18  ;;  %659 = vmatmul.mubr.msk.f32.gmra.mxu1 %vm237_vm0, %v225_v19 }
  0xfc   : > { %v639_v21 = vpop.f32.mrf.mxu0  ;;  %v651_v22 = vpop.f32.mrf.mxu1 }
  0xfd   : > { %v358_v23 = vadd.f32 %v639_v21, %v1060_v20  ;;  %v398_v24 = vadd.f32 %v651_v22, %v1060_v20 }
  0xfe   : > { %v352_v25 = vpop.f32.mrf.mxu0  ;;  %v392_v26 = vpop.f32.mrf.mxu1 }
  0xff   : > { %v432_v27 = vmax.f32 %v358_v23, 0.0  ;;  %v440_v28 = vmax.f32 %v398_v24, 0.0  ;;  %v353_v29 = vadd.f32 %v1060_v20, %v352_v25  ;;  %v393_v30 = vadd.f32 %v1060_v20, %v392_v26 }
 0x100   : > { %v642_v31 = vpop.f32.mrf.mxu0  ;;  %v654_v32 = vpop.f32.mrf.mxu1 }
 0x101   : > { %449 = vst.msk [vmem:[%s1068_s9 + $0x8] sm:$0xff] %vm447_vm1, %v432_v27  ;;  %457 = vst.msk [vmem:[%s1068_s9 + $0x48] sm:$0xff] %vm447_vm1, %v440_v28  ;;  %v431_v33 = vmax.f32 %v353_v29, 0.0  ;;  %v439_v34 = vmax.f32 %v393_v30, 0.0  ;;  %v368_v35 = vadd.f32 %v642_v31, %v1060_v20  ;;  %v408_v36 = vadd.f32 %v654_v32, %v1060_v20 }
 0x102   : > { %v362_v37 = vpop.f32.mrf.mxu0  ;;  %v402_v38 = vpop.f32.mrf.mxu1 }
 0x103   : > { %448 = vst.msk [vmem:[%s1068_s9] sm:$0xff] %vm447_vm1, %v431_v33  ;;  %456 = vst.msk [vmem:[%s1068_s9 + $0x40] sm:$0xff] %vm447_vm1, %v439_v34  ;;  %v434_v39 = vmax.f32 %v368_v35, 0.0  ;;  %v442_v40 = vmax.f32 %v408_v36, 0.0  ;;  %v363_v41 = vadd.f32 %v1060_v20, %v362_v37  ;;  %v403_v42 = vadd.f32 %v1060_v20, %v402_v38 }
 0x104   : > { %v645_v43 = vpop.f32.mrf.mxu0  ;;  %v657_v44 = vpop.f32.mrf.mxu1 }
 0x105   : > { %451 = vst.msk [vmem:[%s1068_s9 + $0x18] sm:$0xff] %vm447_vm1, %v434_v39  ;;  %459 = vst.msk [vmem:[%s1068_s9 + $0x58] sm:$0xff] %vm447_vm1, %v442_v40  ;;  %v433_v45 = vmax.f32 %v363_v41, 0.0  ;;  %v441_v46 = vmax.f32 %v403_v42, 0.0  ;;  %v378_v47 = vadd.f32 %v645_v43, %v1060_v20  ;;  %v418_v48 = vadd.f32 %v657_v44, %v1060_v20 }
 0x106   : > { %v372_v49 = vpop.f32.mrf.mxu0  ;;  %v412_v50 = vpop.f32.mrf.mxu1 }
 0x107   : > { %450 = vst.msk [vmem:[%s1068_s9 + $0x10] sm:$0xff] %vm447_vm1, %v433_v45  ;;  %458 = vst.msk [vmem:[%s1068_s9 + $0x50] sm:$0xff] %vm447_vm1, %v441_v46  ;;  %v436_v51 = vmax.f32 %v378_v47, 0.0  ;;  %v444_v52 = vmax.f32 %v418_v48, 0.0  ;;  %v373_v53 = vadd.f32 %v1060_v20, %v372_v49  ;;  %v413_v54 = vadd.f32 %v1060_v20, %v412_v50 }
 0x108   : > { %v648_v55 = vpop.f32.mrf.mxu0  ;;  %v660_v56 = vpop.f32.mrf.mxu1 }
 0x109   : > { %453 = vst.msk [vmem:[%s1068_s9 + $0x28] sm:$0xff] %vm447_vm1, %v436_v51  ;;  %461 = vst.msk [vmem:[%s1068_s9 + $0x68] sm:$0xff] %vm447_vm1, %v444_v52  ;;  %v435_v57 = vmax.f32 %v373_v53, 0.0  ;;  %v443_v58 = vmax.f32 %v413_v54, 0.0  ;;  %v388_v59 = vadd.f32 %v648_v55, %v1060_v20  ;;  %v428_v60 = vadd.f32 %v660_v56, %v1060_v20 }
 0x10a   : > { %v382_v61 = vpop.f32.mrf.mxu0  ;;  %v422_v62 = vpop.f32.mrf.mxu1 }
 0x10b   : > { %452 = vst.msk [vmem:[%s1068_s9 + $0x20] sm:$0xff] %vm447_vm1, %v435_v57  ;;  %460 = vst.msk [vmem:[%s1068_s9 + $0x60] sm:$0xff] %vm447_vm1, %v443_v58  ;;  %v438_v63 = vmax.f32 %v388_v59, 0.0  ;;  %v446_v0 = vmax.f32 %v428_v60, 0.0  ;;  %v383_v1 = vadd.f32 %v1060_v20, %v382_v61  ;;  %v423_v2 = vadd.f32 %v1060_v20, %v422_v62 }
 0x10d   : > { %455 = vst.msk [vmem:[%s1068_s9 + $0x38] sm:$0xff] %vm447_vm1, %v438_v63  ;;  %463 = vst.msk [vmem:[%s1068_s9 + $0x78] sm:$0xff] %vm447_vm1, %v446_v0  ;;  %v437_v3 = vmax.f32 %v383_v1, 0.0  ;;  %v445_v4 = vmax.f32 %v423_v2, 0.0 }
 0x10f   : > { %454 = vst.msk [vmem:[%s1068_s9 + $0x30] sm:$0xff] %vm447_vm1, %v437_v3  ;;  %462 = vst.msk [vmem:[%s1068_s9 + $0x70] sm:$0xff] %vm447_vm1, %v445_v4 }
 0x110   : > { %792 = shalt.err (!%p789_p6)
}
 0x111   : > { %s793_s7 = scalar_lea.hbm %s1112_s21, 2048  ;;  %s797_s9 = scalar_lea.hbm %s1178_s3, 16384 }
 0x112   : > { %p794_p7 = scmp.ne.s32.totalorder %s1112_s21, %s793_s7  ;;  %p798_p13 = scmp.lt.s32.totalorder %s1112_s21, %s1178_s3 }
 0x113   : > { %p799_p1 = scmp.lt.s32.totalorder %s797_s9, %s793_s7 }
 0x114   : > { %p795_p10 = pnand %p794_p7, %p968_p9 }
 0x115   : > { %p800_p8 = por %p799_p1, %p798_p13 }
 0x116   : > { %p796_p11 = pneg %p795_p10 }
 0x118   : > { %p801_p0 = pnand %p800_p8, %p796_p11 }
 0x11a   : > { %804 = shalt.err (!%p801_p0)
}
 0x11b   : > { %s881_s10 = smov 128   ;;  %s882_s15 = smov 8  }
 0x11c   : > { %671 = dma.vmem_to_hbm [thread:$0]  (%p968_p9), %s1114_s16, 2048, %s1112_s21, %s465_s25, %s881_s10, %s881_s10, %s882_s15  }
 0x11d PF: > { %p682_p2 = scmp.ge.s32.totalorder %s875_s19, 2  ;;  %s496_s20 = sand.u32 1, %s847_s12  }
 0x11e   : > { %s497_s11 = scalar_lea.sflag [#allocation4], %s496_s20 }
 0x11f   : > { %p678_p4 = pnand %p682_p2, %p974_p12 }
 0x121   : > { %p679_p5 = pneg %p678_p4 }
 0x123   : > { %842 = dma.done.wait (%p679_p5), %s497_s11, 2048  }
 0x124   : > { %844 = vsyncadd (%p679_p5), %s497_s11, 4294965248  ;;  %s19_s19 = sadd.s32 1, %s875_s19   ;;  %s1188_s28 = sld [smem:[#allocation8_spill]] }
 0x125   : > { %p16_p3 = scmp.ge.s32.totalorder %s19_s19, 10   ;;  %s1189_s5 = sld [smem:[#allocation9_spill]] }
 0x126   : > { %s1190_s12 = smov %s851_s13  ;;  %s1191_s13 = smov %s855_s14 }
 0x127   : > { %s1192_s14 = smov %s981_s6  ;;  %s1193_s15 = smov %s867_s17 }
 0x128   : > { %s1194_s16 = smov %s871_s18  ;;  %18 = sbr.rel (!%p16_p3) target bundleno = 7 (0x7), region = 77 }
 0x12a   : > { %s1195_s17 = smov %s1188_s28 }
 0x12b   : > { %s1196_s18 = smov %s1189_s5 }
 0x12d   :  { %502 = vsyncpa [#allocation3], 1 }
 0x12e   :  { %504 = vsyncpa [#allocation3 + $0x1], 1 }
 0x12f   :  { %505 = vsyncpa [#allocation4], 1 }
 0x130   :  { %507 = vsyncpa [#allocation4 + $0x1], 1 }

</bundles_post_ra>
